<compile_context>
chip_gen: v7x
topology: tpu7x:2x2x1
jax: 0.10.0
libtpu: 0.0.40
codegen_flags: <defaults>
</compile_context>

<pallas_src>
import jax
import jax.numpy as jnp
from jax.experimental import pallas as pl
from jax.experimental.pallas import tpu as pltpu


def _nonlocal_kernel(x_ref, wphi_ref, wtheta_ref, wg_ref, wmask_ref, o_ref):
    """Fully fused NonLocalBlock forward for one batch element.

    x_ref:      (1, c, hw)   input block (hw = 2 * n)
    wphi_ref:   (ic, c)      1x1 conv_phi weight
    wtheta_ref: (ic, c)      1x1 conv_theta weight
    wg_ref:     (ic, c)      1x1 conv_g weight
    wmask_ref:  (c, ic)      1x1 conv_mask weight
    o_ref:      (1, c, hw)   output block
    """
    f32 = jnp.float32
    mx = x_ref.dtype                       # bf16 in -> bf16 MXU operands (f32 accum)
    ic = wphi_ref.shape[0]
    n = x_ref.shape[-1] // 2

    x = x_ref[0]                           # (c, hw), resident; reused for residual
    x0 = x[:, :n]                          # lane-half 0  == even view-rows
    x1 = x[:, n:]                          # lane-half 1  == odd  view-rows

    wphi, wth, wg, wm = wphi_ref[...], wtheta_ref[...], wg_ref[...], wmask_ref[...]

    # --- 1x1 projections per lane-half (channel matmuls), f32 accumulation -----
    phi0 = jnp.dot(wphi, x0, preferred_element_type=f32)   # (ic, n)
    phi1 = jnp.dot(wphi, x1, preferred_element_type=f32)
    th0 = jnp.dot(wth, x0, preferred_element_type=f32)
    th1 = jnp.dot(wth, x1, preferred_element_type=f32)
    g0 = jnp.dot(wg, x0, preferred_element_type=f32)
    g1 = jnp.dot(wg, x1, preferred_element_type=f32)

    dn_kk = (((0,), (0,)), ((), ()))        # contract view-channel (sublane) dims
    dn_std = (((1,), (0,)), ((), ()))       # plain [M,K] @ [K,N]

    # --- score matrix, TRANSPOSED: s_t[j, i] == S[i, j] -------------------------
    # S[i, j] = sum over all c view-rows of theta_view[., i] * phi_view[., j];
    # the sum is order-independent, so lane-halves can be summed separately or
    # stacked along sublanes.  Stack only when it removes K-padding waste.
    if (ic % 128) != 0:
        phi_s = jnp.concatenate([phi0, phi1], axis=0).astype(mx)    # (c, n)
        th_s = jnp.concatenate([th0, th1], axis=0).astype(mx)
        s_t = jax.lax.dot_general(phi_s, th_s, dn_kk, preferred_element_type=f32)
    else:
        s_t = (
            jax.lax.dot_general(phi0.astype(mx), th0.astype(mx), dn_kk,
                                preferred_element_type=f32)
            + jax.lax.dot_general(phi1.astype(mx), th1.astype(mx), dn_kk,
                                  preferred_element_type=f32)
        )                                                           # (n, n) f32

    # nn.Softmax(dim=1) of S  ==  normalize over i  ==  last axis of s_t.
    m = jnp.max(s_t, axis=-1, keepdims=True)                   # (n, 1)
    e = jnp.exp(s_t - m)                                       # (n, n)
    inv = pl.reciprocal(jnp.sum(e, axis=-1, keepdims=True))    # n recips, not n^2 divides
    a_t = (e * inv).astype(mx)                                 # a_t[j, i] == A[i, j]

    # --- attention output: y[p, i] = sum_j g_view[p, j] * A[i, j] ----------------
    # Clean [C, n_j] @ [n_j, n_i] MXU matmuls — no transpose of the n^2 matrix.
    if (ic % 8) != 0:
        g_s = jnp.concatenate([g0, g1], axis=0).astype(mx)          # (c, n)
        y_s = jax.lax.dot_general(g_s, a_t, dn_std, preferred_element_type=f32)
        y0, y1 = y_s[:ic], y_s[ic:]                                 # (ic, n) each
    else:
        y0 = jax.lax.dot_general(g0.astype(mx), a_t, dn_std, preferred_element_type=f32)
        y1 = jax.lax.dot_general(g1.astype(mx), a_t, dn_std, preferred_element_type=f32)

    # --- conv_mask + residual (x halves already resident); store per half -------
    out0 = jnp.dot(wm, y0.astype(mx), preferred_element_type=f32) + x0.astype(f32)
    out1 = jnp.dot(wm, y1.astype(mx), preferred_element_type=f32) + x1.astype(f32)
    o_ref[0, :, pl.ds(0, n)] = out0.astype(o_ref.dtype)
    o_ref[0, :, pl.ds(n, n)] = out1.astype(o_ref.dtype)


def non_local_block(x, w_phi, w_theta, w_g, w_mask):
    """NonLocalBlock forward.  x: (b, c, h, w); weights are the squeezed 1x1
    conv kernels: w_phi / w_theta / w_g: (c//2, c), w_mask: (c, c//2)."""
    b, c, h, w = x.shape
    assert c % 2 == 0, "NonLocalBlock requires an even channel count"
    ic = c // 2
    hw = h * w
    assert hw % 2 == 0, (
        "h*w must be even: torch's .view(b, c, -1) on the (b, c//2, h*w) "
        "projection requires it")
    n = hw // 2

    x_flat = x.reshape(b, c, hw)
    itemsize = jnp.dtype(x.dtype).itemsize

    cost = pl.CostEstimate(
        flops=int(b * (8 * ic * c * hw + 4 * c * n * n)),
        transcendentals=int(b * n * n),
        bytes_accessed=int((2 * b * c * hw + 4 * ic * c) * itemsize),
    )

    out = pl.pallas_call(
        _nonlocal_kernel,
        out_shape=jax.ShapeDtypeStruct((b, c, hw), x.dtype),
        grid=(b,),
        in_specs=[
            pl.BlockSpec((1, c, hw), lambda i: (i, 0, 0)),
            pl.BlockSpec((ic, c), lambda i: (0, 0)),
            pl.BlockSpec((ic, c), lambda i: (0, 0)),
            pl.BlockSpec((ic, c), lambda i: (0, 0)),
            pl.BlockSpec((c, ic), lambda i: (0, 0)),
        ],
        out_specs=pl.BlockSpec((1, c, hw), lambda i: (i, 0, 0)),
        compiler_params=pltpu.CompilerParams(
            dimension_semantics=("parallel",),
            vmem_limit_bytes=64 * 1024 * 1024,
        ),
        cost_estimate=cost,
    )(x_flat, w_phi, w_theta, w_g, w_mask)

    return out.reshape(b, c, h, w)


def non_local_block_ref(x, w_phi, w_theta, w_g, w_mask):
    """Pure-JAX reference mirroring the PyTorch forward exactly."""
    b, c, h, w = x.shape
    ic = c // 2
    hw = h * w
    xf = x.reshape(b, c, hw)
    phi = jnp.einsum("oc,bcs->bos", w_phi, xf).reshape(b, c, -1)
    theta = jnp.einsum("oc,bcs->bos", w_theta, xf).reshape(b, c, -1).transpose(0, 2, 1)
    g = jnp.einsum("oc,bcs->bos", w_g, xf).reshape(b, c, -1).transpose(0, 2, 1)
    s = jnp.matmul(theta, phi)
    a = jax.nn.softmax(s, axis=1)  # nn.Softmax(dim=1)
    y = jnp.matmul(a, g).transpose(0, 2, 1).reshape(b, ic, hw)
    mask = jnp.einsum("oc,bcs->bos", w_mask, y)
    return (mask + xf).reshape(b, c, h, w)


if __name__ == "__main__":
    b, c, h, w = 2, 4, 16, 16
    ic = c // 2

    key = jax.random.PRNGKey(0)
    kx, kphi, ktheta, kg, kmask = jax.random.split(key, 5)

    x = jax.random.normal(kx, (b, c, h, w), dtype=jnp.float32)
    # Conv2d(channel, channel//2, 1, bias=False) weights (out, in, 1, 1) -> (out, in)
    scale = 1.0 / (c ** 0.5)
    w_phi = jax.random.normal(kphi, (ic, c), dtype=jnp.float32) * scale
    w_theta = jax.random.normal(ktheta, (ic, c), dtype=jnp.float32) * scale
    w_g = jax.random.normal(kg, (ic, c), dtype=jnp.float32) * scale
    w_mask = jax.random.normal(kmask, (c, ic), dtype=jnp.float32) * (1.0 / (ic ** 0.5))

    out = non_local_block(x, w_phi, w_theta, w_g, w_mask)
    out = jax.block_until_ready(out)

    ref = non_local_block_ref(x, w_phi, w_theta, w_g, w_mask)
    assert out.shape == (b, c, h, w)
    assert jnp.allclose(out, ref, atol=1e-4, rtol=1e-4), "mismatch vs reference"

    print("KERNEL_OK")
</pallas_src>

<mosaic_0001>
module attributes {stable_mosaic.version = 11 : i64} {
  func.func @_nonlocal_kernel(%arg0: i32, %arg1: memref<1x4x256xf32, #tpu.memory_space<vmem>>, %arg2: memref<2x4xf32, #tpu.memory_space<vmem>>, %arg3: memref<2x4xf32, #tpu.memory_space<vmem>>, %arg4: memref<2x4xf32, #tpu.memory_space<vmem>>, %arg5: memref<4x2xf32, #tpu.memory_space<vmem>>, %arg6: memref<1x4x256xf32, #tpu.memory_space<vmem>>) attributes {dimension_semantics = [#tpu.dimension_semantics<parallel>], iteration_bounds = array<i64: 2>, scalar_prefetch = 0 : i64, scratch_operands = 0 : i64, tpu.core_type = #tpu.core_type<tc>, window_params = [{transform_indices = @transform_0, window_bounds = array<i64: 1, 4, 256>}, {pipeline_mode = #tpu.pipeline_mode<synchronous>, transform_indices = @transform_1, window_bounds = array<i64: 2, 4>}, {pipeline_mode = #tpu.pipeline_mode<synchronous>, transform_indices = @transform_2, window_bounds = array<i64: 2, 4>}, {pipeline_mode = #tpu.pipeline_mode<synchronous>, transform_indices = @transform_3, window_bounds = array<i64: 2, 4>}, {pipeline_mode = #tpu.pipeline_mode<synchronous>, transform_indices = @transform_4, window_bounds = array<i64: 4, 2>}, {transform_indices = @transform_5, window_bounds = array<i64: 1, 4, 256>}]} {
    %c0 = arith.constant 0 : index
    %c0_0 = arith.constant 0 : index
    %c0_1 = arith.constant 0 : index
    %0 = vector.load %arg1[%c0, %c0_0, %c0_1] : memref<1x4x256xf32, #tpu.memory_space<vmem>>, vector<1x4x256xf32>
    %1 = vector.shape_cast %0 : vector<1x4x256xf32> to vector<4x256xf32>
    %2 = vector.extract_strided_slice %1 {offsets = [0, 0], sizes = [4, 128], strides = [1, 1]} : vector<4x256xf32> to vector<4x128xf32>
    %3 = vector.extract_strided_slice %1 {offsets = [0, 128], sizes = [4, 128], strides = [1, 1]} : vector<4x256xf32> to vector<4x128xf32>
    %c0_2 = arith.constant 0 : index
    %c0_3 = arith.constant 0 : index
    %4 = vector.load %arg2[%c0_2, %c0_3] : memref<2x4xf32, #tpu.memory_space<vmem>>, vector<2x4xf32>
    %c0_4 = arith.constant 0 : index
    %c0_5 = arith.constant 0 : index
    %5 = vector.load %arg3[%c0_4, %c0_5] : memref<2x4xf32, #tpu.memory_space<vmem>>, vector<2x4xf32>
    %c0_6 = arith.constant 0 : index
    %c0_7 = arith.constant 0 : index
    %6 = vector.load %arg4[%c0_6, %c0_7] : memref<2x4xf32, #tpu.memory_space<vmem>>, vector<2x4xf32>
    %c0_8 = arith.constant 0 : index
    %c0_9 = arith.constant 0 : index
    %7 = vector.load %arg5[%c0_8, %c0_9] : memref<4x2xf32, #tpu.memory_space<vmem>>, vector<4x2xf32>
    %cst = arith.constant dense<0.000000e+00> : vector<2x128xf32>
    %8 = tpu.matmul %4, %2, %cst {dimension_numbers = #tpu.dot_dimension_numbers<[1], [0], [0], [1], [0, 0, 1, 1], [], []>} : vector<2x4xf32>, vector<4x128xf32>, vector<2x128xf32> -> vector<2x128xf32>
    %cst_10 = arith.constant dense<0.000000e+00> : vector<2x128xf32>
    %9 = tpu.matmul %4, %3, %cst_10 {dimension_numbers = #tpu.dot_dimension_numbers<[1], [0], [0], [1], [0, 0, 1, 1], [], []>} : vector<2x4xf32>, vector<4x128xf32>, vector<2x128xf32> -> vector<2x128xf32>
    %cst_11 = arith.constant dense<0.000000e+00> : vector<2x128xf32>
    %10 = tpu.matmul %5, %2, %cst_11 {dimension_numbers = #tpu.dot_dimension_numbers<[1], [0], [0], [1], [0, 0, 1, 1], [], []>} : vector<2x4xf32>, vector<4x128xf32>, vector<2x128xf32> -> vector<2x128xf32>
    %cst_12 = arith.constant dense<0.000000e+00> : vector<2x128xf32>
    %11 = tpu.matmul %5, %3, %cst_12 {dimension_numbers = #tpu.dot_dimension_numbers<[1], [0], [0], [1], [0, 0, 1, 1], [], []>} : vector<2x4xf32>, vector<4x128xf32>, vector<2x128xf32> -> vector<2x128xf32>
    %cst_13 = arith.constant dense<0.000000e+00> : vector<2x128xf32>
    %12 = tpu.matmul %6, %2, %cst_13 {dimension_numbers = #tpu.dot_dimension_numbers<[1], [0], [0], [1], [0, 0, 1, 1], [], []>} : vector<2x4xf32>, vector<4x128xf32>, vector<2x128xf32> -> vector<2x128xf32>
    %cst_14 = arith.constant dense<0.000000e+00> : vector<2x128xf32>
    %13 = tpu.matmul %6, %3, %cst_14 {dimension_numbers = #tpu.dot_dimension_numbers<[1], [0], [0], [1], [0, 0, 1, 1], [], []>} : vector<2x4xf32>, vector<4x128xf32>, vector<2x128xf32> -> vector<2x128xf32>
    %14 = tpu.concatenate %8, %9 in 0 : vector<2x128xf32>, vector<2x128xf32> -> vector<4x128xf32>
    %15 = tpu.concatenate %10, %11 in 0 : vector<2x128xf32>, vector<2x128xf32> -> vector<4x128xf32>
    %cst_15 = arith.constant dense<0.000000e+00> : vector<128x128xf32>
    %16 = tpu.matmul %14, %15, %cst_15 {dimension_numbers = #tpu.dot_dimension_numbers<[0], [0], [1], [1], [0, 1, 1, 1], [], []>} : vector<4x128xf32>, vector<4x128xf32>, vector<128x128xf32> -> vector<128x128xf32>
    %cst_16 = arith.constant dense<0xFF800000> : vector<128xf32>
    %17 = vector.multi_reduction <maximumf>, %16, %cst_16 [1] : vector<128x128xf32> to vector<128xf32>
    %18 = vector.shape_cast %17 : vector<128xf32> to vector<128x1xf32>
    %19 = vector.broadcast %18 : vector<128x1xf32> to vector<128x128xf32>
    %20 = arith.subf %16, %19 : vector<128x128xf32>
    %21 = math.exp %20 : vector<128x128xf32>
    %cst_17 = arith.constant dense<0.000000e+00> : vector<128xf32>
    %22 = vector.multi_reduction <add>, %21, %cst_17 [1] : vector<128x128xf32> to vector<128xf32>
    %23 = vector.shape_cast %22 : vector<128xf32> to vector<128x1xf32>
    %24 = tpu.reciprocal %23 : vector<128x1xf32> -> vector<128x1xf32>
    %25 = vector.broadcast %24 : vector<128x1xf32> to vector<128x128xf32>
    %26 = arith.mulf %21, %25 : vector<128x128xf32>
    %27 = tpu.concatenate %12, %13 in 0 : vector<2x128xf32>, vector<2x128xf32> -> vector<4x128xf32>
    %cst_18 = arith.constant dense<0.000000e+00> : vector<4x128xf32>
    %28 = tpu.matmul %27, %26, %cst_18 {dimension_numbers = #tpu.dot_dimension_numbers<[1], [0], [0], [1], [0, 0, 1, 1], [], []>} : vector<4x128xf32>, vector<128x128xf32>, vector<4x128xf32> -> vector<4x128xf32>
    %29 = vector.extract_strided_slice %28 {offsets = [0, 0], sizes = [2, 128], strides = [1, 1]} : vector<4x128xf32> to vector<2x128xf32>
    %30 = vector.extract_strided_slice %28 {offsets = [2, 0], sizes = [2, 128], strides = [1, 1]} : vector<4x128xf32> to vector<2x128xf32>
    %cst_19 = arith.constant dense<0.000000e+00> : vector<4x128xf32>
    %31 = tpu.matmul %7, %29, %cst_19 {dimension_numbers = #tpu.dot_dimension_numbers<[1], [0], [0], [1], [0, 0, 1, 1], [], []>} : vector<4x2xf32>, vector<2x128xf32>, vector<4x128xf32> -> vector<4x128xf32>
    %32 = arith.addf %31, %2 : vector<4x128xf32>
    %cst_20 = arith.constant dense<0.000000e+00> : vector<4x128xf32>
    %33 = tpu.matmul %7, %30, %cst_20 {dimension_numbers = #tpu.dot_dimension_numbers<[1], [0], [0], [1], [0, 0, 1, 1], [], []>} : vector<4x2xf32>, vector<2x128xf32>, vector<4x128xf32> -> vector<4x128xf32>
    %34 = arith.addf %33, %3 : vector<4x128xf32>
    %c0_21 = arith.constant 0 : index
    %c0_22 = arith.constant 0 : index
    %c0_23 = arith.constant 0 : index
    %35 = vector.load %arg6[%c0_21, %c0_22, %c0_23] : memref<1x4x256xf32, #tpu.memory_space<vmem>>, vector<1x4x128xf32>
    %36 = vector.shape_cast %35 : vector<1x4x128xf32> to vector<4x128xf32>
    %37 = vector.shape_cast %32 : vector<4x128xf32> to vector<1x4x128xf32>
    tpu.vector_store %arg6[%c0_21, %c0_22, %c0_23], %37 {strides = array<i32>} : memref<1x4x256xf32, #tpu.memory_space<vmem>>, vector<1x4x128xf32>,
    %c0_24 = arith.constant 0 : index
    %c0_25 = arith.constant 0 : index
    %c128 = arith.constant 128 : index
    %38 = vector.load %arg6[%c0_24, %c0_25, %c128] : memref<1x4x256xf32, #tpu.memory_space<vmem>>, vector<1x4x128xf32>
    %39 = vector.shape_cast %38 : vector<1x4x128xf32> to vector<4x128xf32>
    %40 = vector.shape_cast %34 : vector<4x128xf32> to vector<1x4x128xf32>
    tpu.vector_store %arg6[%c0_24, %c0_25, %c128], %40 {strides = array<i32>} : memref<1x4x256xf32, #tpu.memory_space<vmem>>, vector<1x4x128xf32>,
    return
  }
  func.func @transform_0(%arg0: i32) -> (i32, i32, i32) {
    %c0_i32 = arith.constant 0 : i32
    %c0_i32_0 = arith.constant 0 : i32
    %c0_i32_1 = arith.constant 0 : i32
    return %arg0, %c0_i32, %c0_i32_0 : i32, i32, i32
  }
  func.func @transform_1(%arg0: i32) -> (i32, i32) {
    %c0_i32 = arith.constant 0 : i32
    %c0_i32_0 = arith.constant 0 : i32
    %c0_i32_1 = arith.constant 0 : i32
    return %c0_i32, %c0_i32_0 : i32, i32
  }
  func.func @transform_2(%arg0: i32) -> (i32, i32) {
    %c0_i32 = arith.constant 0 : i32
    %c0_i32_0 = arith.constant 0 : i32
    %c0_i32_1 = arith.constant 0 : i32
    return %c0_i32, %c0_i32_0 : i32, i32
  }
  func.func @transform_3(%arg0: i32) -> (i32, i32) {
    %c0_i32 = arith.constant 0 : i32
    %c0_i32_0 = arith.constant 0 : i32
    %c0_i32_1 = arith.constant 0 : i32
    return %c0_i32, %c0_i32_0 : i32, i32
  }
  func.func @transform_4(%arg0: i32) -> (i32, i32) {
    %c0_i32 = arith.constant 0 : i32
    %c0_i32_0 = arith.constant 0 : i32
    %c0_i32_1 = arith.constant 0 : i32
    return %c0_i32, %c0_i32_0 : i32, i32
  }
  func.func @transform_5(%arg0: i32) -> (i32, i32, i32) {
    %c0_i32 = arith.constant 0 : i32
    %c0_i32_0 = arith.constant 0 : i32
    %c0_i32_1 = arith.constant 0 : i32
    return %arg0, %c0_i32, %c0_i32_0 : i32, i32, i32
  }
}

</mosaic_0001>

<bundles_post_ra>
// kernel: tpu_custom_call.1
= control target key start
LH: loop header
LB: loop body
LE: loop exit
PB: predicated region body
PF: predicated region fallthrough
CT: control target
= control target key end

     0   :  { %10 = vsyncpa [#allocation3], 0  ;;  %s2573_s0 = inlined_call_operand.hbm [shape: f32[2,4,256], index: 0, kind: input, shape index: {}]   ;;  %s2574_s1 = inlined_call_operand.hbm [shape: f32[2,4], index: 1, kind: input, shape index: {}]   ;;  %s2575_s2 = inlined_call_operand.hbm [shape: f32[2,4], index: 2, kind: input, shape index: {}]   ;;  %s2576_s3 = inlined_call_operand.hbm [shape: f32[2,4], index: 3, kind: input, shape index: {}]   ;;  %s2577_s4 = inlined_call_operand.hbm [shape: f32[4,2], index: 4, kind: input, shape index: {}]   ;;  %s2578_s5 = inlined_call_operand.hbm [shape: f32[2,4,256], index: 5, kind: output, shape index: {}]  }
   0x1   :  { %12 = vsyncpa [#allocation3 + $0x1], 0 }
   0x2   :  { %13 = vsyncpa [#allocation6], 0 }
   0x3   :  { %14 = vsyncpa [#allocation9], 0 }
   0x4   :  { %15 = vsyncpa [#allocation4], 0 }
   0x5   :  { %17 = vsyncpa [#allocation4 + $0x1], 0  ;;  %s2108_s18 = smov 0   ;;  %s2110_s19 = smov 0  }
   0x6   :  { %s2112_s20 = smov 0   ;;  %s2114_s21 = smov 0  }
   0x7 LB: > { %s2069_s22 = smov [#allocation5]   ;;  %s2129_s24 = sadd.s32 4294967295, %s2067_s21   ;;  %s2067_s21 = sphi %s2114_s21, %s2602_s21   ;;  %s2063_s20 = sphi %s2112_s20, %s2601_s20   ;;  %s2059_s19 = sphi %s2110_s19, %s2600_s19   ;;  %s2055_s18 = sphi %s2108_s18, %s2599_s18  }
   0x8   : > { %s177_s23 = sshll.u32 %s2069_s22, 4  ;;  %p1465_p0 = scmp.ge.s32.totalorder %s2067_s21, 1  ;;  %s2134_s23 = int_to_ptr.vmem [resolvable:$true] %s177_s23 }
   0x9   : > { %p2579_p1 = scmp.eq.s32.totalorder %s2129_s24, 0  ;;  %p164_p2 = scmp.lt.s32.totalorder %s2067_s21, 3 }
   0xa   : > { %s2070_s26 = smov [#allocation8]   ;;  %s2071_s28 = smov [#allocation7]  }
   0xb   : > { %p2136_p3 = pnand %p1465_p0, %p164_p2  ;;  %s199_s27 = sshll.u32 %s2070_s26, 4  ;;  %s2143_s27 = int_to_ptr.vmem [resolvable:$true] %s199_s27 }
   0xc   : > { %s188_s29 = sshll.u32 %s2071_s28, 4  ;;  %s2072_s6 = smov [#allocation10]   ;;  %s2151_s29 = int_to_ptr.vmem [resolvable:$true] %s188_s29 }
   0xd   : > { %s2582_s25 = scalar_select %p2136_p3, 1, 0 }
   0xe   : > { %p1716_p5 = pneg %p2136_p3  ;;  %s2153_s7 = sshll.u32 %s2072_s6, 4  ;;  %s211_s7 = int_to_ptr.vmem [resolvable:$true] %s2153_s7 }
   0xf   : > { %s1851_s10 = scalar_lea.hbm %s2574_s1, 32 }
  0x10   : > { %p2147_p6 = pnand %p1716_p5, %p2579_p1  ;;  %p1852_p7 = scmp.ne.s32.totalorder %s2574_s1, %s1851_s10 }
  0x11   : > { %p1858_p11 = scmp.lt.u32.totalorder %s1851_s10, %s2574_s1 }
  0x12   : > { %p2163_p8 = pneg %p2147_p6 }
  0x14   : > { %p1854_p9 = pnand %p2163_p8, %p1852_p7 }
  0x16   : > { %p1855_p10 = pneg %p1854_p9 }
  0x18   : > { %p1860_p12 = pnand %p1858_p11, %p1855_p10 }
  0x1a   : > { %1863 = shalt.err (!%p1860_p12)
}
  0x1b   : > { %s1864_s16 = scalar_lea.vmem %s2134_s23, 32  ;;  %p1872_p5 = scmp.lt.s32.totalorder %s2134_s23, %s2134_s23 }
  0x1c   : > { %p1865_p13 = scmp.ne.s32.totalorder %s2134_s23, %s1864_s16  ;;  %p1873_p4 = scmp.lt.s32.totalorder %s1864_s16, %s1864_s16 }
  0x1e   : > { %p1867_p0 = pnand %p1865_p13, %p2163_p8  ;;  %p1874_p7 = por %p1873_p4, %p1872_p5 }
  0x20   : > { %p1868_p2 = pneg %p1867_p0 }
  0x22   : > { %p1875_p9 = pnand %p1874_p7, %p1868_p2 }
  0x24   : > { %1878 = shalt.err (!%p1875_p9)
}
  0x25   : > { %1719 = dma.hbm_to_vmem [thread:$0]  (!%p2147_p6), %s2574_s1, 32, %s2134_s23, [#allocation6]  }
  0x26   : > { %s1879_s6 = scalar_lea.hbm %s2576_s3, 32 }
  0x27   : > { %p1880_p10 = scmp.ne.s32.totalorder %s2576_s3, %s1879_s6  ;;  %p1886_p12 = scmp.lt.u32.totalorder %s1879_s6, %s2576_s3 }
  0x29   : > { %p1882_p4 = pnand %p1880_p10, %p2163_p8 }
  0x2b   : > { %p1883_p11 = pneg %p1882_p4 }
  0x2d   : > { %p1888_p13 = pnand %p1886_p12, %p1883_p11 }
  0x2f   : > { %1891 = shalt.err (!%p1888_p13)
}
  0x30   : > { %s1892_s23 = scalar_lea.vmem %s2143_s27, 32  ;;  %p1900_p7 = scmp.lt.s32.totalorder %s2143_s27, %s2143_s27 }
  0x31   : > { %p1893_p0 = scmp.ne.s32.totalorder %s2143_s27, %s1892_s23  ;;  %p1901_p9 = scmp.lt.s32.totalorder %s1892_s23, %s1892_s23 }
  0x33   : > { %p1895_p2 = pnand %p1893_p0, %p2163_p8  ;;  %p1902_p10 = por %p1901_p9, %p1900_p7 }
  0x35   : > { %p1896_p5 = pneg %p1895_p2 }
  0x37   : > { %p1903_p4 = pnand %p1902_p10, %p1896_p5 }
  0x39   : > { %1906 = shalt.err (!%p1903_p4)
}
  0x3a   : > { %1725 = dma.hbm_to_vmem [thread:$0]  (!%p2147_p6), %s2576_s3, 32, %s2143_s27, [#allocation9]  }
  0x3b   : > { %s1907_s17 = scalar_lea.hbm %s2575_s2, 32 }
  0x3c   : > { %p1908_p11 = scmp.ne.s32.totalorder %s2575_s2, %s1907_s17  ;;  %p1914_p0 = scmp.lt.u32.totalorder %s1907_s17, %s2575_s2 }
  0x3e   : > { %p1910_p12 = pnand %p1908_p11, %p2163_p8 }
  0x40   : > { %p1911_p13 = pneg %p1910_p12 }
  0x42   : > { %p1916_p2 = pnand %p1914_p0, %p1911_p13 }
  0x44   : > { %1919 = shalt.err (!%p1916_p2)
}
  0x45   : > { %s1920_s27 = scalar_lea.vmem %s2151_s29, 32  ;;  %p1928_p10 = scmp.lt.s32.totalorder %s2151_s29, %s2151_s29 }
  0x46   : > { %p1921_p5 = scmp.ne.s32.totalorder %s2151_s29, %s1920_s27  ;;  %p1929_p4 = scmp.lt.s32.totalorder %s1920_s27, %s1920_s27 }
  0x48   : > { %p1923_p7 = pnand %p1921_p5, %p2163_p8  ;;  %p1930_p11 = por %p1929_p4, %p1928_p10 }
  0x4a   : > { %p1924_p9 = pneg %p1923_p7 }
  0x4c   : > { %p1931_p12 = pnand %p1930_p11, %p1924_p9 }
  0x4e   : > { %1934 = shalt.err (!%p1931_p12)
}
  0x4f   : > { %1722 = dma.hbm_to_vmem [thread:$0]  (!%p2147_p6), %s2575_s2, 32, %s2151_s29, [#allocation6]  }
  0x50   : > { %s1935_s23 = scalar_lea.hbm %s2577_s4, 64 }
  0x51   : > { %p1936_p13 = scmp.ne.s32.totalorder %s2577_s4, %s1935_s23  ;;  %p1942_p5 = scmp.lt.u32.totalorder %s1935_s23, %s2577_s4 }
  0x53   : > { %p1938_p0 = pnand %p1936_p13, %p2163_p8 }
  0x55   : > { %p1939_p2 = pneg %p1938_p0 }
  0x57   : > { %p1944_p7 = pnand %p1942_p5, %p1939_p2 }
  0x59   : > { %1947 = shalt.err (!%p1944_p7)
}
  0x5a   : > { %s1948_s17 = scalar_lea.vmem %s211_s7, 64  ;;  %p1956_p11 = scmp.lt.s32.totalorder %s211_s7, %s211_s7 }
  0x5b   : > { %p1949_p9 = scmp.ne.s32.totalorder %s211_s7, %s1948_s17  ;;  %p1957_p12 = scmp.lt.s32.totalorder %s1948_s17, %s1948_s17 }
  0x5d   : > { %p1951_p10 = pnand %p1949_p9, %p2163_p8  ;;  %p1958_p1 = por %p1957_p12, %p1956_p11 }
  0x5f   : > { %p1952_p4 = pneg %p1951_p10 }
  0x61   : > { %p1959_p3 = pnand %p1958_p1, %p1952_p4 }
  0x63   : > { %1962 = shalt.err (!%p1959_p3)
}
  0x64   : > { %1728 = dma.hbm_to_vmem [thread:$0]  (!%p2147_p6), %s2577_s4, 64, %s211_s7, [#allocation9]  }
  0x65   : > { %s1464_s13 = sadd.s32 4294967294, %s2067_s21   ;;  %s2251_s30 = sadd.s32 1, %s2067_s21  }
  0x66   : > { %s27_s26 = ssub.s32 %s2067_s21, %s2251_s30  ;;  %s30_s28 = sadd.s32 1, %s2063_s20 }
  0x67   : > { %p28_p1 = scmp.eq.s32.totalorder %s27_s26, 0  ;;  %p37_p3 = scmp.ne.s32.totalorder %s2063_s20, %s2059_s19 }
  0x68   : > { %p38_p8 = scmp.eq.s32.totalorder %s2067_s21, 0  ;;  %p43_p13 = scmp.ne.s32.totalorder %s2059_s19, %s2055_s18 }
  0x69   : > { %s2262_s6 = scalar_select %p28_p1, %s2063_s20, %s30_s28  }
  0x6a   : > { %p2264_p0 = por %p38_p8, %p37_p3  ;;  %p2586_p2 = scmp.eq.s32.totalorder %s2129_s24, 0 }
  0x6b   : > { %p151_p5 = scmp.eq.s32.totalorder %s2129_s24, 1  ;;  %p157_p7 = scmp.eq.s32.totalorder %s1464_s13, 1 }
  0x6c   : > { %p2270_p6 = por %p2586_p2, %p43_p13  ;;  %p1741_p9 = scmp.lt.s32.totalorder %s2067_s21, 2 }
  0x6d   : > { %s221_s8 = sand.u32 1, %s2063_s20   ;;  %p2277_p10 = por %p151_p5, %p37_p3 }
  0x6e   : > { %p2281_p4 = por %p157_p7, %p43_p13  ;;  %s1471_s11 = sshll.u32 %s221_s8, 3 }
  0x6f   : > { %s2588_s9 = scalar_select %p2277_p10, 1, 0 }
  0x70   : > { %s2589_s10 = scalar_select %p2281_p4, 1, 0 }
  0x71   : > { %s1519_s23 = sshll.u32 %s2067_s21, 7  ;;  %s225_s16 = scalar_lea.vmem [#allocation2], %s1471_s11 }
  0x72   : > { %s2289_s15 = scalar_lea.hbm %s2573_s0, %s1519_s23  ;;  %s233_s17 = sshll.u32 %s225_s16, 4  ;;  %s2291_s17 = int_to_ptr.vmem [resolvable:$true] %s233_s17 }
  0x73   : > { %p2295_p11 = pnand %p1741_p9, %p2264_p0  ;;  %s222_s22 = scalar_lea.sflag [#allocation3], %s221_s8 }
  0x74   : > { %s1963_s13 = scalar_lea.hbm %s2289_s15, 128  ;;  %s1968_s11 = scalar_lea.hbm %s2573_s0, 256 }
  0x75   : > { %p1964_p12 = scmp.ne.s32.totalorder %s2289_s15, %s1963_s13  ;;  %p1965_p1 = pneg %p2295_p11 }
  0x76   : > { %p1969_p13 = scmp.lt.u32.totalorder %s2289_s15, %s2573_s0  ;;  %p1970_p0 = scmp.lt.u32.totalorder %s1968_s11, %s1963_s13 }
  0x77   : > { %p1966_p3 = pnand %p1965_p1, %p1964_p12  ;;  %p1972_p5 = scmp.lt.u32.totalorder %s1963_s13, %s2289_s15 }
  0x78   : > { %p1971_p2 = por %p1970_p0, %p1969_p13 }
  0x79   : > { %p1967_p8 = pneg %p1966_p3 }
  0x7a   : > { %p1973_p7 = por %p1972_p5, %p1971_p2 }
  0x7c   : > { %p1974_p9 = pnand %p1973_p7, %p1967_p8 }
  0x7e   : > { %1977 = shalt.err (!%p1974_p9)
}
  0x7f   : > { %s1978_s8 = scalar_lea.vmem %s2291_s17, 128  ;;  %s2073_s12 = smov [#allocation2]  }
  0x80   : > { %p1979_p12 = scmp.ne.s32.totalorder %s2291_s17, %s1978_s8  ;;  %s1983_s14 = sshll.u32 %s2073_s12, 4  ;;  %s1984_s14 = int_to_ptr.vmem [resolvable:$false] %s1983_s14 }
  0x81   : > { %s1985_s16 = scalar_lea.vmem %s1984_s14, 256  ;;  %p1986_p10 = scmp.lt.s32.totalorder %s2291_s17, %s1984_s14 }
  0x82   : > { %p1981_p3 = pnand %p1979_p12, %p1965_p1  ;;  %p1987_p13 = scmp.lt.s32.totalorder %s1985_s16, %s1978_s8 }
  0x84   : > { %p1982_p4 = pneg %p1981_p3  ;;  %p1988_p0 = por %p1987_p13, %p1986_p10 }
  0x86   : > { %p1989_p2 = pnand %p1988_p0, %p1982_p4 }
  0x88   : > { %1992 = shalt.err (!%p1989_p2)
}
  0x89   : > { %1732 = dma.hbm_to_vmem [thread:$0]  (!%p2295_p11), %s2289_s15, 128, %s2291_s17, %s222_s22  }
  0x8a   : > { %p2591_p8 = scmp.ne.s32.totalorder %s2582_s25, 0 }
  0x8b   : > { %s2327_s13 = sand.u32 (!%p2591_p8), 1, %s2059_s19  }
  0x8c   : > { %242 = sbr.rel (%p2591_p8) target bundleno = 1542 (0x606), region = 40  ;;  %s1475_s26 = sshll.u32 (!%p2591_p8), %s2327_s13, 3 }
  0x8d   : > { %s245_s28 = scalar_lea.sflag (!%p2591_p8), [#allocation3], %s2327_s13  ;;  %s248_s11 = scalar_lea.vmem (!%p2591_p8), [#allocation2], %s1475_s26 }
  0x93   : > { %2038 = dma.done.wait (%p2270_p6), %s245_s28, 128  }
  0x94   : > { %2040 = vsyncadd (%p2270_p6), %s245_s28, 4294967168  ;;  %p2592_p10 = scmp.eq.s32.totalorder %s2129_s24, 0 }
  0x96   : > { %2042 = dma.done.wait (%p2592_p10), [#allocation6], 64   ;;  %p2593_p4 = pmov %p2592_p10 }
  0x98   : > { %2044 = vsyncadd (%p2593_p4), [#allocation6], 4294967232  ;;  %p2594_p11 = pmov %p2593_p4 }
  0x99   : > { %p2595_p1 = pmov %p2593_p4 }
  0x9a   : > { %2046 = dma.done.wait (%p2594_p11), [#allocation9], 96  }
  0x9b   : > { %2048 = vsyncadd (%p2595_p1), [#allocation9], 4294967200  ;;  %v2074_v0 = vmov 0.0   ;;  %vm2075_vm0 = vmmov 0   ;;  %vm300_vm1 = vcmask 1043456   ;;  %vm296_vm2 = vcmask 31744  }
  0x9c   : > { %1576 = vmatprep.subr.mxu1 %v2074_v0  ;;  %1571 = vmatprep.subr.mxu0 %v2074_v0  ;;  %v2351_v1 = vld [vmem:[%s248_s11] sm:$0xff]  ;;  %v292_v2 = vld [vmem:[#allocation5] sm:$0x3]  ;;  %v293_v4 = vld [vmem:[#allocation7] sm:$0x3]  ;;  %vm736_vm3 = vcmask 1041408  }
  0x9d   : > { %1578 = vmatprep.mubr.msk.f32.mxu1 %vm2075_vm0, %v2074_v0  ;;  %1573 = vmatprep.mubr.msk.f32.mxu0 %vm2075_vm0, %v2074_v0  ;;  %v2355_v3 = vcombine.high %v2351_v1, %v2351_v1  ;;  %v294_v5 = vld [vmem:[#allocation8] sm:$0x3]  ;;  %vm1188_vm4 = vcmask 15360   ;;  %s1520_s25 = sshll.u32 %s2129_s24, 7  ;;  %s290_s7 = scalar_lea.vmem [#allocation11], %s1475_s26 }
  0x9e   : > { %1572 = vmatpush3.msk.msra.mxu0 %vm300_vm1, %v2351_v1  ;;  %s1356_s15 = sshll.u32 %s290_s7, 4  ;;  %s2529_s22 = scalar_lea.hbm %s2578_s5, %s1520_s25  ;;  %s2531_s15 = int_to_ptr.vmem [resolvable:$true] %s1356_s15 }
  0x9f   : > { %1574 = vmatmul.mubr.msk.f32.vlgmr.msra.gmra.mrb[0].mxu0 %vm296_vm2, %v292_v2  ;;  %1581 = vmatprep.subr.mxu0 %v2074_v0  ;;  %s1342_s24 = scalar_lea.sflag [#allocation4], %s2327_s13  ;;  %s1993_s27 = scalar_lea.vmem %s2531_s15, 128 }
  0xa0   : > { %1577 = vmatpush3.msk.msra.mxu1 %vm300_vm1, %v2355_v3  ;;  %1582 = vmatpush3.msk.msra.mxu0 %vm300_vm1, %v2351_v1  ;;  %p1994_p6 = scmp.ne.s32.totalorder %s2531_s15, %s1993_s27  ;;  %p2596_p5 = scmp.ne.s32.totalorder %s2588_s9, 0 }
  0xa1   : > { %1579 = vmatmul.mubr.msk.f32.vlgmr.msra.gmra.mrb[0].mxu1 %vm296_vm2, %v292_v2  ;;  %1586 = vmatprep.subr.mxu1 %v2074_v0  ;;  %s2077_s23 = smov [#allocation11]  }
  0xa2   : > { %1587 = vmatpush3.msk.msra.mxu1 %vm300_vm1, %v2355_v3  ;;  %1588 = vmatprep.mubr.msk.f32.mxu1 %vm2075_vm0, %v2074_v0  ;;  %p1995_p7 = pnand %p1994_p6, %p2596_p5  ;;  %s1997_s8 = sshll.u32 %s2077_s23, 4  ;;  %s1998_s8 = int_to_ptr.vmem [resolvable:$false] %s1997_s8 }
  0xa3   : > { %1583 = vmatprep.mubr.msk.f32.mxu0 %vm2075_vm0, %v2074_v0  ;;  %1591 = vmatprep.subr.mxu0 %v2074_v0  ;;  %s1999_s12 = scalar_lea.vmem %s1998_s8, 256  ;;  %p2000_p12 = scmp.lt.s32.totalorder %s2531_s15, %s1998_s8 }
  0xa4   : > { %1584 = vmatmul.mubr.msk.f32.vlgmr.msra.gmra.mrb[2].mxu0 %vm296_vm2, %v293_v4  ;;  %1596 = vmatprep.subr.mxu1 %v2074_v0  ;;  %p1996_p9 = pneg %p1995_p7  ;;  %p2001_p3 = scmp.lt.s32.totalorder %s1999_s12, %s1993_s27 }
  0xa5   : > { %1589 = vmatmul.mubr.msk.f32.vlgmr.msra.gmra.mrb[2].mxu1 %vm296_vm2, %v293_v4  ;;  %1592 = vmatpush3.msk.msra.mxu0 %vm300_vm1, %v2351_v1 }
  0xa6   : > { %1593 = vmatprep.mubr.msk.f32.mxu0 %vm2075_vm0, %v2074_v0  ;;  %1597 = vmatpush3.msk.msra.mxu1 %vm300_vm1, %v2355_v3  ;;  %p2002_p13 = por %p2001_p3, %p2000_p12 }
  0xa7   : > { %1598 = vmatprep.mubr.msk.f32.mxu1 %vm2075_vm0, %v2074_v0 }
  0xa8   : > { %1594 = vmatmul.mubr.msk.f32.vlgmr.msra.gmra.mrb[4].mxu0 %vm296_vm2, %v294_v5  ;;  %p2003_p0 = pnand %p2002_p13, %p1996_p9 }
  0xa9   : > { %1599 = vmatmul.mubr.msk.f32.vlgmr.msra.gmra.mrb[4].mxu1 %vm296_vm2, %v294_v5 }
  0xaa   : > { %1659 = vmatprep.mubr.msk.f32.mxu1 %vm2075_vm0, %v2074_v0 }
 0x172   : > { %v370_v6 = vpop.f32.mrb[0].mxu0 }
 0x173   : > { %v1575_v7 = vpop.f32.mrb[1].mxu0 }
 0x174   : > { %v443_v8 = vpop.f32.mrb[0].mxu1 }
 0x175   : > { %v734_v9 = vrot.slane %v443_v8, 6  ;;  %v1580_v10 = vpop.f32.mrb[1].mxu1 }
 0x177   : > { %v737_v11 = vsel %vm736_vm3, %v370_v6, %v734_v9  ;;  %v516_v13 = vpop.f32.mrb[2].mxu0 }
 0x178   : > { %742 = vxpose.xlu0.b32.start.end [1/1] (short) %v737_v11, 128  ;;  %v586_v12 = vpop.f32.mrb[2].mxu1  ;;  %v1585_v16 = vpop.f32.mrb[3].mxu0 }
 0x179   : > { %v739_v14 = vrot.slane %v586_v12, 6  ;;  %v1590_v15 = vpop.f32.mrb[3].mxu1 }
 0x17b   : > { %v741_v17 = vsel %vm736_vm3, %v516_v13, %v739_v14  ;;  %v659_v18 = vpop.f32.mrb[4].mxu0 }
 0x17c   : > { %1601 = vmatprep.subr.msk.mxu0 %vm300_vm1, %v741_v17  ;;  %v729_v19 = vpop.f32.mrb[4].mxu1  ;;  %v1595_v20 = vpop.f32.mrb[5].mxu0 }
 0x17d   : > { %1602 = vmatpush3.msk.msra.mxu0 %vm300_vm1, %v741_v17  ;;  %v1600_v21 = vpop.f32.mrb[5].mxu1  ;;  %v1115_v38 = vrot.slane %v729_v19, 6 }
 0x17e   : > { %1662 = vmatprep.subr.mxu0 %v2074_v0 }
 0x17f   : > { %v2413_v39 = vsel %vm736_vm3, %v659_v18, %v1115_v38 }
 0x1f8   : > { %v758_v22 = vpop.trf.xlu0 }
 0x1f9   : > { %1603 = vmatprep.mubr.msk.f32.mxu0 %vm296_vm2, %v758_v22 }
 0x1fc   : > { %v759_v23 = vpop.trf.xlu0 }
 0x1fd   : > { %1604 = vmatmul.mubr.msk.f32.vlgmr.msra.gmra.mrb[6].mxu0 %vm296_vm2, %v759_v23 }
 0x200   : > { %v760_v24 = vpop.trf.xlu0 }
 0x201   : > { %1606 = vmatprep.mubr.msk.f32.mxu0 %vm296_vm2, %v760_v24 }
 0x204   : > { %v761_v25 = vpop.trf.xlu0 }
 0x205   : > { %1607 = vmatmul.mubr.msk.f32.gmra.mrb[8].mxu0 %vm296_vm2, %v761_v25 }
 0x208   : > { %v762_v26 = vpop.trf.xlu0 }
 0x209   : > { %1609 = vmatprep.mubr.msk.f32.mxu0 %vm296_vm2, %v762_v26 }
 0x20c   : > { %v763_v27 = vpop.trf.xlu0 }
 0x20d   : > { %1610 = vmatmul.mubr.msk.f32.gmra.mrb[10].mxu0 %vm296_vm2, %v763_v27 }
 0x210   : > { %v764_v28 = vpop.trf.xlu0 }
 0x211   : > { %1612 = vmatprep.mubr.msk.f32.mxu0 %vm296_vm2, %v764_v28 }
 0x214   : > { %v765_v29 = vpop.trf.xlu0 }
 0x215   : > { %1613 = vmatmul.mubr.msk.f32.gmra.mrb[12].mxu0 %vm296_vm2, %v765_v29 }
 0x218   : > { %v766_v30 = vpop.trf.xlu0 }
 0x219   : > { %1615 = vmatprep.mubr.msk.f32.mxu0 %vm296_vm2, %v766_v30 }
 0x21c   : > { %v767_v31 = vpop.trf.xlu0 }
 0x21d   : > { %1616 = vmatmul.mubr.msk.f32.gmra.mrb[14].mxu0 %vm296_vm2, %v767_v31 }
 0x220   : > { %v768_v32 = vpop.trf.xlu0 }
 0x221   : > { %1618 = vmatprep.mubr.msk.f32.mxu0 %vm296_vm2, %v768_v32 }
 0x224   : > { %v769_v33 = vpop.trf.xlu0 }
 0x225   : > { %1619 = vmatmul.mubr.msk.f32.gmra.mrb[16].mxu0 %vm296_vm2, %v769_v33 }
 0x228   : > { %v770_v34 = vpop.trf.xlu0 }
 0x229   : > { %1621 = vmatprep.mubr.msk.f32.mxu0 %vm296_vm2, %v770_v34 }
 0x22c   : > { %v771_v35 = vpop.trf.xlu0 }
 0x22d   : > { %1622 = vmatmul.mubr.msk.f32.gmra.mrb[18].mxu0 %vm296_vm2, %v771_v35 }
 0x230   : > { %v772_v36 = vpop.trf.xlu0 }
 0x231   : > { %1624 = vmatprep.mubr.msk.f32.mxu0 %vm296_vm2, %v772_v36 }
 0x234   : > { %v773_v37 = vpop.trf.xlu0 }
 0x235   : > { %1625 = vmatmul.mubr.msk.f32.gmra.mrb[20].mxu0 %vm296_vm2, %v773_v37 }
 0x236   : > { %1664 = vmatprep.mubr.msk.f32.mxu0 %vm2075_vm0, %v2074_v0 }
 0x2d0   : > { %v1605_v40 = vpop.f32.mrb[6].mxu0 }
 0x2d1   : > { %972 = vmax.xlane.f32.xlu1 %v1605_v40  ;;  %v891_v41 = vpop.f32.mrb[7].mxu0 }
 0x2d2   : > { %970 = vmax.xlane.f32.xlu0 %v891_v41 }
 0x2d8   : > { %v1608_v42 = vpop.f32.mrb[8].mxu0 }
 0x2d9   : > { %976 = vmax.xlane.f32.xlu1 %v1608_v42  ;;  %v901_v43 = vpop.f32.mrb[9].mxu0 }
 0x2dd   : > { %974 = vmax.xlane.f32.xlu1 %v901_v43 }
 0x2e0   : > { %v1611_v44 = vpop.f32.mrb[10].mxu0 }
 0x2e1   : > { %980 = vmax.xlane.f32.xlu1 %v1611_v44  ;;  %v911_v45 = vpop.f32.mrb[11].mxu0 }
 0x2e5   : > { %978 = vmax.xlane.f32.xlu1 %v911_v45 }
 0x2e8   : > { %v1614_v46 = vpop.f32.mrb[12].mxu0 }
 0x2e9   : > { %984 = vmax.xlane.f32.xlu1 %v1614_v46  ;;  %v921_v47 = vpop.f32.mrb[13].mxu0 }
 0x2ed   : > { %982 = vmax.xlane.f32.xlu1 %v921_v47 }
 0x2f0   : > { %v1617_v48 = vpop.f32.mrb[14].mxu0 }
 0x2f1   : > { %988 = vmax.xlane.f32.xlu1 %v1617_v48  ;;  %v2415_v49 = vpop.f32.mrb[15].mxu0 }
 0x2f5   : > { %986 = vmax.xlane.f32.xlu1 %v2415_v49 }
 0x2f8   : > { %v2418_v50 = vpop.f32.mrb[16].mxu0 }
 0x2f9   : > { %992 = vmax.xlane.f32.xlu1 %v2418_v50  ;;  %v2421_v51 = vpop.f32.mrb[17].mxu0 }
 0x2fd   : > { %990 = vmax.xlane.f32.xlu1 %v2421_v51 }
 0x300   : > { %v2424_v52 = vpop.f32.mrb[18].mxu0 }
 0x301   : > { %996 = vmax.xlane.f32.xlu1 %v2424_v52  ;;  %v2427_v53 = vpop.f32.mrb[19].mxu0 }
 0x305   : > { %994 = vmax.xlane.f32.xlu1 %v2427_v53 }
 0x308   : > { %v2430_v54 = vpop.f32.mrb[20].mxu0 }
 0x309   : > { %v2432_v55 = vpop.f32.mrb[21].mxu0 }
 0x30a   : > { %998 = vmax.xlane.f32.xlu1 %v2432_v55 }
 0x30e   : > { %1000 = vmax.xlane.f32.xlu1 %v2430_v54 }
 0x35e   : > { %v973_v56 = vpop.xlane.xlu1 %972 }
 0x35f   : > { %v1003_v57 = vsub.f32 %v1605_v40, %v973_v56  ;;  %v971_v58 = vpop.xlane.xlu0 %970 }
 0x360   : > { %v1002_v59 = vsub.f32 %v891_v41, %v971_v58  ;;  %v2076_v41 = vmov 0.0|0.0  }
 0x361   : > { %v1020_v60 = vmul.f32 1.442695, %v1003_v57  ;;  %1672 = vmatprep.subr.bf16.mxu1 %v2076_v41 }
 0x362   : > { %v1018_v61 = vmul.f32 1.442695, %v1002_v59 }
 0x363   : > { %1787 = vpow2.f32 %v1020_v60 }
 0x364   : > { %1789 = vpow2.f32 %v1018_v61 }
 0x366   : > { %v977_v62 = vpop.xlane.xlu1 %976 }
 0x367   : > { %v1005_v63 = vsub.f32 %v1608_v42, %v977_v62 }
 0x369   : > { %v1024_v2 = vmul.f32 1.442695, %v1005_v63 }
 0x36a   : > { %v975_v4 = vpop.xlane.xlu1 %974 }
 0x36b   : > { %1791 = vpow2.f32 %v1024_v2  ;;  %v1004_v5 = vsub.f32 %v901_v43, %v975_v4 }
 0x36d   : > { %v2436_v6 = vpop.eup %1787  ;;  %v1022_v7 = vmul.f32 1.442695, %v1004_v5 }
 0x36e   : > { %v981_v8 = vpop.xlane.xlu1 %980  ;;  %1052 = vadd.xlane.f32.xlu1 %v2436_v6  ;;  %v2439_v10 = vpop.eup %1789 }
 0x36f   : > { %1793 = vpow2.f32 %v1022_v7  ;;  %v1007_v9 = vsub.f32 %v1611_v44, %v981_v8 }
 0x371   : > { %v1028_v11 = vmul.f32 1.442695, %v1007_v9 }
 0x372   : > { %v979_v12 = vpop.xlane.xlu1 %978  ;;  %1050 = vadd.xlane.f32.xlu1 %v2439_v10 }
 0x373   : > { %1795 = vpow2.f32 %v1028_v11  ;;  %v1006_v13 = vsub.f32 %v911_v45, %v979_v12 }
 0x375   : > { %v2442_v14 = vpop.eup %1791  ;;  %v1026_v15 = vmul.f32 1.442695, %v1006_v13 }
 0x376   : > { %v985_v16 = vpop.xlane.xlu1 %984  ;;  %1056 = vadd.xlane.f32.xlu1 %v2442_v14 }
 0x377   : > { %1797 = vpow2.f32 %v1026_v15  ;;  %v1009_v17 = vsub.f32 %v1614_v46, %v985_v16 }
 0x379   : > { %v2445_v18 = vpop.eup %1793  ;;  %v1032_v19 = vmul.f32 1.442695, %v1009_v17 }
 0x37a   : > { %v983_v20 = vpop.xlane.xlu1 %982  ;;  %1054 = vadd.xlane.f32.xlu1 %v2445_v18 }
 0x37b   : > { %1799 = vpow2.f32 %v1032_v19  ;;  %v1008_v21 = vsub.f32 %v921_v47, %v983_v20 }
 0x37d   : > { %v2448_v22 = vpop.eup %1795  ;;  %v1030_v23 = vmul.f32 1.442695, %v1008_v21 }
 0x37e   : > { %v989_v24 = vpop.xlane.xlu1 %988  ;;  %1060 = vadd.xlane.f32.xlu1 %v2448_v22 }
 0x37f   : > { %1801 = vpow2.f32 %v1030_v23  ;;  %v1011_v25 = vsub.f32 %v1617_v48, %v989_v24 }
 0x381   : > { %v2451_v26 = vpop.eup %1797  ;;  %v1036_v27 = vmul.f32 1.442695, %v1011_v25 }
 0x382   : > { %v987_v28 = vpop.xlane.xlu1 %986  ;;  %1058 = vadd.xlane.f32.xlu1 %v2451_v26 }
 0x383   : > { %1803 = vpow2.f32 %v1036_v27  ;;  %v1010_v29 = vsub.f32 %v2415_v49, %v987_v28 }
 0x385   : > { %v2455_v30 = vpop.eup %1799  ;;  %v1034_v31 = vmul.f32 1.442695, %v1010_v29 }
 0x386   : > { %v993_v32 = vpop.xlane.xlu1 %992  ;;  %1064 = vadd.xlane.f32.xlu1 %v2455_v30 }
 0x387   : > { %1805 = vpow2.f32 %v1034_v31  ;;  %v1013_v33 = vsub.f32 %v2418_v50, %v993_v32 }
 0x389   : > { %v2459_v34 = vpop.eup %1801  ;;  %v1040_v35 = vmul.f32 1.442695, %v1013_v33 }
 0x38a   : > { %v991_v36 = vpop.xlane.xlu1 %990  ;;  %1062 = vadd.xlane.f32.xlu1 %v2459_v34 }
 0x38b   : > { %1807 = vpow2.f32 %v1040_v35  ;;  %v1012_v37 = vsub.f32 %v2421_v51, %v991_v36 }
 0x38d   : > { %v2463_v38 = vpop.eup %1803  ;;  %v1038_v40 = vmul.f32 1.442695, %v1012_v37 }
 0x38e   : > { %v997_v42 = vpop.xlane.xlu1 %996  ;;  %1068 = vadd.xlane.f32.xlu1 %v2463_v38 }
 0x38f   : > { %1809 = vpow2.f32 %v1038_v40  ;;  %v1015_v43 = vsub.f32 %v2424_v52, %v997_v42 }
 0x391   : > { %v2468_v44 = vpop.eup %1805  ;;  %v1044_v45 = vmul.f32 1.442695, %v1015_v43 }
 0x392   : > { %v995_v46 = vpop.xlane.xlu1 %994  ;;  %1066 = vadd.xlane.f32.xlu1 %v2468_v44 }
 0x393   : > { %1811 = vpow2.f32 %v1044_v45  ;;  %v1014_v47 = vsub.f32 %v2427_v53, %v995_v46 }
 0x395   : > { %v2472_v48 = vpop.eup %1807  ;;  %v1042_v49 = vmul.f32 1.442695, %v1014_v47 }
 0x396   : > { %1072 = vadd.xlane.f32.xlu1 %v2472_v48 }
 0x397   : > { %1813 = vpow2.f32 %v1042_v49  ;;  %v999_v50 = vpop.xlane.xlu1 %998 }
 0x398   : > { %v1016_v51 = vsub.f32 %v2432_v55, %v999_v50 }
 0x399   : > { %v2476_v56 = vpop.eup %1809 }
 0x39a   : > { %v1046_v52 = vmul.f32 1.442695, %v1016_v51  ;;  %1070 = vadd.xlane.f32.xlu1 %v2476_v56 }
 0x39b   : > { %v1001_v57 = vpop.xlane.xlu1 %1000 }
 0x39c   : > { %1815 = vpow2.f32 %v1046_v52  ;;  %v1017_v58 = vsub.f32 %v2430_v54, %v1001_v57 }
 0x39d   : > { %v2480_v59 = vpop.eup %1811 }
 0x39e   : > { %v1048_v53 = vmul.f32 1.442695, %v1017_v58  ;;  %1076 = vadd.xlane.f32.xlu0 %v2480_v59 }
 0x3a0   : > { %1817 = vpow2.f32 %v1048_v53 }
 0x3a1   : > { %v2483_v60 = vpop.eup %1813 }
 0x3a2   : > { %1074 = vadd.xlane.f32.xlu1 %v2483_v60 }
 0x3a6   : > { %v2486_v55 = vpop.eup %1815 }
 0x3a7   : > { %1078 = vadd.xlane.f32.xlu1 %v2486_v55 }
 0x3aa   : > { %v2489_v61 = vpop.eup %1817 }
 0x3ab   : > { %1080 = vadd.xlane.f32.xlu0 %v2489_v61 }
 0x3fb   : > { %v1053_v62 = vpop.xlane.xlu1 %1052 }
 0x3fc   : > { %1819 = vrcp.f32 %v1053_v62 }
 0x3ff   : > { %v1051_v54 = vpop.xlane.xlu1 %1050 }
 0x400   : > { %1821 = vrcp.f32 %v1051_v54 }
 0x403   : > { %v1057_v63 = vpop.xlane.xlu1 %1056 }
 0x404   : > { %1823 = vrcp.f32 %v1057_v63 }
 0x406   : > { %v1820_v4 = vpop.eup %1819 }
 0x407   : > { %v1055_v2 = vpop.xlane.xlu1 %1054  ;;  %v1099_v9 = vmul.f32 %v1820_v4, %v2436_v6 }
 0x408   : > { %1825 = vrcp.f32 %v1055_v2 }
 0x40a   : > { %v1822_v5 = vpop.eup %1821 }
 0x40b   : > { %v1061_v7 = vpop.xlane.xlu1 %1060  ;;  %v1098_v8 = vmul.f32 %v1822_v5, %v2439_v10 }
 0x40c   : > { %1827 = vrcp.f32 %v1061_v7 }
 0x40d   : > { %v1673_v11 = vpack.c.bf16 %v1099_v9, %v1098_v8 }
 0x40e   : > { %v1824_v13 = vpop.eup %1823 }
 0x40f   : > { %1674 = vmatpush3.bf16.msra.mxu1 %v1673_v11  ;;  %v1059_v12 = vpop.xlane.xlu1 %1058  ;;  %v1101_v19 = vmul.f32 %v1824_v13, %v2442_v14 }
 0x410   : > { %1829 = vrcp.f32 %v1059_v12  ;;  %1675 = vmatprep.subr.bf16.mxu1 %v2076_v41 }
 0x412   : > { %v1826_v15 = vpop.eup %1825 }
 0x413   : > { %v1065_v16 = vpop.xlane.xlu1 %1064  ;;  %v1100_v17 = vmul.f32 %v1826_v15, %v2445_v18 }
 0x414   : > { %1831 = vrcp.f32 %v1065_v16 }
 0x415   : > { %v1676_v20 = vpack.c.bf16 %v1101_v19, %v1100_v17 }
 0x416   : > { %v1828_v21 = vpop.eup %1827 }
 0x417   : > { %1677 = vmatpush3.bf16.msra.mxu1 %v1676_v20  ;;  %v1063_v10 = vpop.xlane.xlu1 %1062  ;;  %v1103_v25 = vmul.f32 %v1828_v21, %v2448_v22 }
 0x418   : > { %1833 = vrcp.f32 %v1063_v10  ;;  %1678 = vmatprep.subr.bf16.mxu1 %v2076_v41 }
 0x41a   : > { %v1830_v6 = vpop.eup %1829 }
 0x41b   : > { %v1069_v23 = vpop.xlane.xlu1 %1068  ;;  %v1102_v24 = vmul.f32 %v1830_v6, %v2451_v26 }
 0x41c   : > { %1835 = vrcp.f32 %v1069_v23 }
 0x41d   : > { %v1679_v27 = vpack.c.bf16 %v1103_v25, %v1102_v24 }
 0x41e   : > { %v1832_v28 = vpop.eup %1831 }
 0x41f   : > { %1680 = vmatpush3.bf16.msra.mxu1 %v1679_v27  ;;  %v1067_v18 = vpop.xlane.xlu1 %1066  ;;  %v1105_v32 = vmul.f32 %v1832_v28, %v2455_v30 }
 0x420   : > { %1837 = vrcp.f32 %v1067_v18  ;;  %1681 = vmatprep.subr.bf16.mxu1 %v2076_v41 }
 0x422   : > { %v1834_v14 = vpop.eup %1833 }
 0x423   : > { %v1073_v29 = vpop.xlane.xlu1 %1072  ;;  %v1104_v31 = vmul.f32 %v1834_v14, %v2459_v34 }
 0x424   : > { %1839 = vrcp.f32 %v1073_v29 }
 0x425   : > { %v1682_v33 = vpack.c.bf16 %v1105_v32, %v1104_v31 }
 0x426   : > { %v1836_v35 = vpop.eup %1835 }
 0x427   : > { %1683 = vmatpush3.bf16.msra.mxu1 %v1682_v33  ;;  %v1071_v26 = vpop.xlane.xlu1 %1070  ;;  %v1107_v40 = vmul.f32 %v1836_v35, %v2463_v38 }
 0x428   : > { %1841 = vrcp.f32 %v1071_v26  ;;  %1684 = vmatprep.subr.bf16.mxu1 %v2076_v41 }
 0x42a   : > { %v1838_v22 = vpop.eup %1837 }
 0x42b   : > { %v1077_v36 = vpop.xlane.xlu0 %1076  ;;  %v1106_v37 = vmul.f32 %v1838_v22, %v2468_v44 }
 0x42c   : > { %1843 = vrcp.f32 %v1077_v36 }
 0x42d   : > { %v1685_v42 = vpack.c.bf16 %v1107_v40, %v1106_v37 }
 0x42e   : > { %v1840_v43 = vpop.eup %1839 }
 0x42f   : > { %1686 = vmatpush3.bf16.msra.mxu1 %v1685_v42  ;;  %v1075_v34 = vpop.xlane.xlu1 %1074  ;;  %v1109_v46 = vmul.f32 %v1840_v43, %v2472_v48 }
 0x430   : > { %1845 = vrcp.f32 %v1075_v34  ;;  %1687 = vmatprep.subr.bf16.mxu1 %v2076_v41 }
 0x432   : > { %v1842_v30 = vpop.eup %1841 }
 0x433   : > { %v1108_v45 = vmul.f32 %v1842_v30, %v2476_v56 }
 0x434   : > { %v1079_v47 = vpop.xlane.xlu1 %1078 }
 0x435   : > { %v1688_v49 = vpack.c.bf16 %v1109_v46, %v1108_v45  ;;  %1847 = vrcp.f32 %v1079_v47 }
 0x436   : > { %v1844_v44 = vpop.eup %1843 }
 0x437   : > { %1689 = vmatpush3.bf16.msra.mxu1 %v1688_v49  ;;  %v1111_v52 = vmul.f32 %v1844_v44, %v2480_v59  ;;  %v295_v59 = vld [vmem:[#allocation10] sm:$0xf] }
 0x438   : > { %v1081_v50 = vpop.xlane.xlu0 %1080  ;;  %1690 = vmatprep.subr.bf16.mxu1 %v2076_v41 }
 0x439   : > { %1849 = vrcp.f32 %v1081_v50 }
 0x43a   : > { %v1846_v38 = vpop.eup %1845 }
 0x43b   : > { %v1110_v51 = vmul.f32 %v1846_v38, %v2483_v60 }
 0x43d   : > { %v1691_v57 = vpack.c.bf16 %v1111_v52, %v1110_v51 }
 0x43f   : > { %1692 = vmatpush3.bf16.msra.mxu1 %v1691_v57  ;;  %v1848_v56 = vpop.eup %1847 }
 0x440   : > { %1693 = vmatprep.subr.bf16.mxu1 %v2076_v41  ;;  %v1112_v58 = vmul.f32 %v1848_v56, %v2486_v55 }
 0x443   : > { %v1850_v48 = vpop.eup %1849 }
 0x444   : > { %v1113_v53 = vmul.f32 %v1850_v48, %v2489_v61 }
 0x446   : > { %v1694_v62 = vpack.c.bf16 %v1113_v53, %v1112_v58 }
 0x448   : > { %1695 = vmatpush3.bf16.msra.mxu1 %v1694_v62 }
 0x449   : > { %1667 = vmatprep.subr.mxu1 %v2074_v0 }
 0x44b   : > { %1660 = vmatmul.mubr.f32.vlgmr.msra.gmra.mrb[6].mxu1 %v2413_v39 }
 0x44c   : > { %1669 = vmatprep.mubr.msk.f32.mxu1 %vm2075_vm0, %v2074_v0 }
 0x51e   : > { %v1184_v41 = vpop.f32.mrb[6].mxu1 }
 0x51f   : > { %v1265_v60 = vrot.slane %v1184_v41, 2  ;;  %v1661_v54 = vpop.f32.mrb[7].mxu1  ;;  %1663 = vmatpush3.msk.msra.mxu0 %vm736_vm3, %v1184_v41 }
 0x520   : > { %1665 = vmatmul.mubr.msk.f32.vlgmr.msra.gmra.mrb[22].mxu0 %vm1188_vm4, %v295_v59 }
 0x521   : > { %1668 = vmatpush3.msk.msra.mxu1 %vm736_vm3, %v1265_v60 }
 0x522   : > { %1670 = vmatmul.mubr.msk.f32.vlgmr.msra.gmra.mrb[8].mxu1 %vm1188_vm4, %v295_v59 }
 0x5f3   : > { %v1261_v55 = vpop.f32.mrb[22].mxu0 }
 0x5f4   : > { %v1262_v0 = vadd.f32 %v1261_v55, %v2351_v1  ;;  %v1666_v39 = vpop.f32.mrb[23].mxu0 }
 0x5f5   : > { %v1335_v61 = vpop.f32.mrb[8].mxu1 }
 0x5f6   : > { %1339 = vst [vmem:[%s290_s7] sm:$0xf] %v1262_v0  ;;  %v1336_v63 = vadd.f32 %v1335_v61, %v2355_v3  ;;  %v1671_v2 = vpop.f32.mrb[9].mxu1 }
 0x5f8   : > { %1340 = vst [vmem:[%s290_s7 + $0x4] sm:$0xf] %v1336_v63 }
 0x5f9   : > { %2006 = shalt.err (!%p2003_p0)
}
 0x5fa   : > { %s2007_s14 = scalar_lea.hbm %s2529_s22, 128  ;;  %s2011_s26 = scalar_lea.hbm %s2578_s5, 256 }
 0x5fb   : > { %p2008_p2 = scmp.ne.s32.totalorder %s2529_s22, %s2007_s14  ;;  %p2012_p4 = scmp.lt.u32.totalorder %s2529_s22, %s2578_s5 }
 0x5fc   : > { %p2013_p11 = scmp.lt.u32.totalorder %s2011_s26, %s2007_s14  ;;  %p2015_p6 = scmp.lt.u32.totalorder %s2007_s14, %s2529_s22 }
 0x5fd   : > { %p2009_p8 = pnand %p2008_p2, %p2596_p5 }
 0x5fe   : > { %p2014_p1 = por %p2013_p11, %p2012_p4 }
 0x5ff   : > { %p2010_p10 = pneg %p2009_p8 }
 0x600   : > { %p2016_p7 = por %p2015_p6, %p2014_p1 }
 0x602   : > { %p2017_p9 = pnand %p2016_p7, %p2010_p10 }
 0x604   : > { %2020 = shalt.err (!%p2017_p9)
}
 0x605   : > { %1714 = dma.vmem_to_hbm [thread:$0]  (%p2596_p5), %s2531_s15, 128, %s2529_s22, %s1342_s24  }
 0x606 PF: > { %s1368_s25 = sand.u32 1, %s2055_s18   ;;  %p2597_p12 = scmp.ne.s32.totalorder %s2589_s10, 0 }
 0x607   : > { %p2598_p3 = scmp.ge.s32.totalorder %s2067_s21, 2  ;;  %s1369_s7 = scalar_lea.sflag [#allocation4], %s1368_s25 }
 0x609   : > { %p1734_p13 = pnand %p2598_p3, %p2597_p12 }
 0x60b   : > { %2050 = dma.done.wait (!%p1734_p13), %s1369_s7, 128  }
 0x60c   : > { %2052 = vsyncadd (!%p1734_p13), %s1369_s7, 4294967168  ;;  %p20_p0 = scmp.ge.s32.totalorder %s2251_s30, 4   ;;  %s2599_s18 = smov %s2059_s19 }
 0x60d   : > { %s2600_s19 = smov %s2063_s20  ;;  %s2601_s20 = smov %s2262_s6 }
 0x60e   : > { %s2602_s21 = smov %s2251_s30  ;;  %22 = sbr.rel (!%p20_p0) target bundleno = 7 (0x7), region = 101 }
 0x615   :  { %1374 = vsyncpa [#allocation3], 1 }
 0x616   :  { %1376 = vsyncpa [#allocation3 + $0x1], 1 }
 0x617   :  { %1377 = vsyncpa [#allocation6], 1 }
 0x618   :  { %1378 = vsyncpa [#allocation9], 1 }
 0x619   :  { %1379 = vsyncpa [#allocation4], 1 }
 0x61a   :  { %1381 = vsyncpa [#allocation4 + $0x1], 1 }

</bundles_post_ra>
